<compile_context>
chip_gen: v7x
topology: tpu7x:2x2x1
jax: 0.10.0
libtpu: 0.0.40
codegen_flags: <defaults>
</compile_context>

<pallas_src>
import functools

import jax
import jax.numpy as jnp
from jax.experimental import pallas as pl
from jax.experimental.pallas import tpu as pltpu

_LANES = 128
_SUBLANES = 8


def _wlsl_kernel(x_ref, t_ref, w_ref, out_ref):
    # x_ref  : VMEM (TB, C)      logits, native dtype
    # t_ref  : VMEM (TB, C)      target distribution, native dtype
    # w_ref  : VMEM (TB, 1) f32  per-sample weight * (1/B); 0 for padded rows
    # out_ref: VMEM (1, 8, 128) f32  block partial sum (broadcast over tile)
    x = x_ref[...].astype(jnp.float32)
    t = t_ref[...].astype(jnp.float32)
    w = w_ref[...]

    m = jnp.max(x, axis=-1, keepdims=True)                              # (TB,1)
    lse = jnp.log(jnp.sum(jnp.exp(x - m), axis=-1, keepdims=True))      # (TB,1)
    t_dot_x = jnp.sum(t * x, axis=-1, keepdims=True)                    # (TB,1)
    t_sum = jnp.sum(t, axis=-1, keepdims=True)                          # (TB,1)

    # sum_j -t_j * log_softmax(x)_j  ==  t_sum*(m+lse) - sum_j t_j*x_j  (exact)
    loss = t_sum * (m + lse) - t_dot_x                                  # (TB,1)

    partial = jnp.sum(loss * w)                                         # scalar
    out_ref[...] = jnp.full(out_ref.shape, partial, dtype=jnp.float32)


def _round_up(x, n):
    return ((x + n - 1) // n) * n


def _choose_block_rows(b, c, x_bytes, t_bytes, budget_bytes):
    # Largest sublane-aligned row-tile such that one buffer of (x + t) fits
    # the per-buffer budget; double-buffering doubles this at runtime.
    per_row = max(1, c * (x_bytes + t_bytes))
    tb = budget_bytes // per_row
    tb = (tb // _SUBLANES) * _SUBLANES
    tb = min(tb, 2048, _round_up(b, _SUBLANES))
    return max(_SUBLANES, tb)


@functools.partial(jax.jit, static_argnames=("weights", "block_rows"))
def weighted_label_smooth_loss(inputs, targets, keywords, weights=None,
                               block_rows=None):
    """JAX/Pallas equivalent of WeightedLabelSmoothLoss.forward.

    inputs, targets : [B, C] float arrays (any float dtype, kept native)
    keywords        : [B] bool/int array (truthy -> apply `weights`)
    weights         : python float scalar or None (static)
    Returns a scalar float32 (mean weighted loss).
    """
    B, C = inputs.shape
    assert targets.shape == (B, C)

    inv_b = jnp.float32(1.0 / float(B))
    if weights is None:
        per_w = jnp.full((B,), inv_b, dtype=jnp.float32)
    else:
        kw = jnp.asarray(keywords).reshape(B).astype(bool)
        per_w = jnp.where(kw, jnp.float32(weights), jnp.float32(1.0)) * inv_b

    x_bytes = jnp.dtype(inputs.dtype).itemsize
    t_bytes = jnp.dtype(targets.dtype).itemsize
    if block_rows is None:
        tb = _choose_block_rows(B, C, x_bytes, t_bytes, 12 * 1024 * 1024)
    else:
        tb = max(_SUBLANES, _round_up(int(block_rows), _SUBLANES))

    nb = pl.cdiv(B, tb)
    b_pad = nb * tb
    if b_pad != B:
        pad = b_pad - B
        inputs = jnp.pad(inputs, ((0, pad), (0, 0)))
        targets = jnp.pad(targets, ((0, pad), (0, 0)))
        per_w = jnp.pad(per_w, ((0, pad),))  # padded rows -> weight 0 -> no contribution
    per_w = per_w.reshape(b_pad, 1)

    partials = pl.pallas_call(
        _wlsl_kernel,
        out_shape=jax.ShapeDtypeStruct((nb, _SUBLANES, _LANES), jnp.float32),
        grid_spec=pltpu.PrefetchScalarGridSpec(
            num_scalar_prefetch=0,
            grid=(nb,),
            in_specs=[
                pl.BlockSpec((tb, C), lambda i: (i, 0)),   # logits
                pl.BlockSpec((tb, C), lambda i: (i, 0)),   # targets
                pl.BlockSpec((tb, 1), lambda i: (i, 0)),   # folded per-sample weight
            ],
            out_specs=pl.BlockSpec((1, _SUBLANES, _LANES), lambda i: (i, 0, 0)),
        ),
        compiler_params=pltpu.CompilerParams(
            dimension_semantics=("parallel",),        # blocks independent -> megacore OK
            vmem_limit_bytes=40 * 1024 * 1024,
        ),
    )(inputs, targets, per_w)

    # Tiny final reduce over per-block partials (1/B already folded into per_w).
    return jnp.sum(partials[:, 0, 0])


def _reference(inputs, targets, keywords, weights):
    log_probs = jax.nn.log_softmax(inputs.astype(jnp.float32), axis=1)
    loss = (-targets.astype(jnp.float32) * log_probs).sum(axis=-1)
    if weights is not None:
        w = jnp.where(jnp.asarray(keywords, bool), jnp.float32(weights), 1.0)
        loss = loss * w
    return jnp.mean(loss)


if __name__ == "__main__":
    key = jax.random.PRNGKey(0)
    k1, k2, k3 = jax.random.split(key, 3)

    # --- case 1: small f32, with module weight -------------------------------
    B, C = 8, 32
    inputs = jax.random.normal(k1, (B, C), dtype=jnp.float32)
    labels = jax.random.randint(k2, (B,), 0, C)
    eps = 0.1
    targets = jax.nn.one_hot(labels, C, dtype=jnp.float32) * (1.0 - eps) + eps / C
    keywords = jax.random.bernoulli(k3, 0.5, (B,))
    module_weight = 0.3

    out = weighted_label_smooth_loss(inputs, targets, keywords, weights=module_weight)
    out = jax.block_until_ready(out)
    ref = _reference(inputs, targets, keywords, module_weight)
    assert jnp.allclose(out, ref, atol=1e-5, rtol=1e-5), (out, ref)

    # --- case 2: weights=None path -------------------------------------------
    out2 = jax.block_until_ready(
        weighted_label_smooth_loss(inputs, targets, keywords, weights=None))
    ref2 = _reference(inputs, targets, keywords, None)
    assert jnp.allclose(out2, ref2, atol=1e-5, rtol=1e-5), (out2, ref2)

    # --- case 3: bf16 inputs, batch not a multiple of the tile, multi-block grid
    k4, k5, k6 = jax.random.split(jax.random.PRNGKey(1), 3)
    B3, C3 = 20, 64
    x3 = jax.random.normal(k4, (B3, C3), dtype=jnp.float32).astype(jnp.bfloat16)
    lbl3 = jax.random.randint(k5, (B3,), 0, C3)
    t3 = (jax.nn.one_hot(lbl3, C3, dtype=jnp.float32) * (1.0 - eps) + eps / C3
          ).astype(jnp.bfloat16)
    kw3 = jax.random.bernoulli(k6, 0.5, (B3,))
    out3 = jax.block_until_ready(
        weighted_label_smooth_loss(x3, t3, kw3, weights=module_weight, block_rows=8))
    ref3 = _reference(x3, t3, kw3, module_weight)
    assert jnp.allclose(out3, ref3, atol=1e-4, rtol=1e-4), (out3, ref3)

    print("KERNEL_OK")
</pallas_src>

<mosaic_0001>
module attributes {stable_mosaic.version = 11 : i64} {
  func.func @_wlsl_kernel(%arg0: i32, %arg1: memref<8x32xf32, #tpu.memory_space<vmem>>, %arg2: memref<8x32xf32, #tpu.memory_space<vmem>>, %arg3: memref<8x1xf32, #tpu.memory_space<vmem>>, %arg4: memref<1x8x128xf32, #tpu.memory_space<vmem>>) attributes {dimension_semantics = [#tpu.dimension_semantics<parallel>], iteration_bounds = array<i64: 1>, scalar_prefetch = 0 : i64, scratch_operands = 0 : i64, tpu.core_type = #tpu.core_type<tc>, window_params = [{transform_indices = @transform_0, window_bounds = array<i64: 8, 32>}, {transform_indices = @transform_1, window_bounds = array<i64: 8, 32>}, {transform_indices = @transform_2, window_bounds = array<i64: 8, 1>}, {transform_indices = @transform_3, window_bounds = array<i64: 1, 8, 128>}]} {
    %c0 = arith.constant 0 : index
    %c0_0 = arith.constant 0 : index
    %0 = vector.load %arg1[%c0, %c0_0] : memref<8x32xf32, #tpu.memory_space<vmem>>, vector<8x32xf32>
    %c0_1 = arith.constant 0 : index
    %c0_2 = arith.constant 0 : index
    %1 = vector.load %arg2[%c0_1, %c0_2] : memref<8x32xf32, #tpu.memory_space<vmem>>, vector<8x32xf32>
    %c0_3 = arith.constant 0 : index
    %c0_4 = arith.constant 0 : index
    %2 = vector.load %arg3[%c0_3, %c0_4] : memref<8x1xf32, #tpu.memory_space<vmem>>, vector<8x1xf32>
    %cst = arith.constant dense<0xFF800000> : vector<8xf32>
    %3 = vector.multi_reduction <maximumf>, %0, %cst [1] : vector<8x32xf32> to vector<8xf32>
    %4 = vector.shape_cast %3 : vector<8xf32> to vector<8x1xf32>
    %5 = vector.broadcast %4 : vector<8x1xf32> to vector<8x32xf32>
    %6 = arith.subf %0, %5 : vector<8x32xf32>
    %7 = math.exp %6 : vector<8x32xf32>
    %cst_5 = arith.constant dense<0.000000e+00> : vector<8xf32>
    %8 = vector.multi_reduction <add>, %7, %cst_5 [1] : vector<8x32xf32> to vector<8xf32>
    %9 = vector.shape_cast %8 : vector<8xf32> to vector<8x1xf32>
    %10 = math.log %9 : vector<8x1xf32>
    %11 = arith.mulf %1, %0 : vector<8x32xf32>
    %cst_6 = arith.constant dense<0.000000e+00> : vector<8xf32>
    %12 = vector.multi_reduction <add>, %11, %cst_6 [1] : vector<8x32xf32> to vector<8xf32>
    %13 = vector.shape_cast %12 : vector<8xf32> to vector<8x1xf32>
    %cst_7 = arith.constant dense<0.000000e+00> : vector<8xf32>
    %14 = vector.multi_reduction <add>, %1, %cst_7 [1] : vector<8x32xf32> to vector<8xf32>
    %15 = vector.shape_cast %14 : vector<8xf32> to vector<8x1xf32>
    %16 = arith.addf %4, %10 : vector<8x1xf32>
    %17 = arith.mulf %15, %16 : vector<8x1xf32>
    %18 = arith.subf %17, %13 : vector<8x1xf32>
    %19 = arith.mulf %18, %2 : vector<8x1xf32>
    %20 = vector.shape_cast %19 : vector<8x1xf32> to vector<1x8x1xf32>
    %cst_8 = arith.constant dense<0.000000e+00> : vector<1xf32>
    %21 = vector.multi_reduction <add>, %20, %cst_8 [1, 2] : vector<1x8x1xf32> to vector<1xf32>
    %22 = vector.shape_cast %21 : vector<1xf32> to vector<1x1x1xf32>
    %23 = vector.extract %22[0, 0, 0] : f32 from vector<1x1x1xf32>
    %24 = vector.broadcast %23 : f32 to vector<1x8x128xf32>
    %c0_9 = arith.constant 0 : index
    %c0_10 = arith.constant 0 : index
    %c0_11 = arith.constant 0 : index
    %25 = vector.load %arg4[%c0_9, %c0_10, %c0_11] : memref<1x8x128xf32, #tpu.memory_space<vmem>>, vector<1x8x128xf32>
    tpu.vector_store %arg4[%c0_9, %c0_10, %c0_11], %24 {strides = array<i32>} : memref<1x8x128xf32, #tpu.memory_space<vmem>>, vector<1x8x128xf32>,
    return
  }
  func.func @transform_0(%arg0: i32) -> (i32, i32) {
    %c0_i32 = arith.constant 0 : i32
    %c0_i32_0 = arith.constant 0 : i32
    return %arg0, %c0_i32 : i32, i32
  }
  func.func @transform_1(%arg0: i32) -> (i32, i32) {
    %c0_i32 = arith.constant 0 : i32
    %c0_i32_0 = arith.constant 0 : i32
    return %arg0, %c0_i32 : i32, i32
  }
  func.func @transform_2(%arg0: i32) -> (i32, i32) {
    %c0_i32 = arith.constant 0 : i32
    %c0_i32_0 = arith.constant 0 : i32
    return %arg0, %c0_i32 : i32, i32
  }
  func.func @transform_3(%arg0: i32) -> (i32, i32, i32) {
    %c0_i32 = arith.constant 0 : i32
    %c0_i32_0 = arith.constant 0 : i32
    %c0_i32_1 = arith.constant 0 : i32
    return %arg0, %c0_i32, %c0_i32_0 : i32, i32, i32
  }
}

</mosaic_0001>

<bundles_post_ra>
// kernel: weighted_label_smooth_loss.1
= control target key start
LH: loop header
LB: loop body
LE: loop exit
PB: predicated region body
PF: predicated region fallthrough
CT: control target
= control target key end

     0   :  { %vm17_vm0 = vcmask 261120   ;;  %vm40_vm1 = vcmask 7168   ;;  %s99_s0 = inlined_call_operand.vmem [shape: f32[8,32], index: 0, kind: input, shape index: {}]   ;;  %s100_s1 = inlined_call_operand.vmem [shape: f32[8,32], index: 1, kind: input, shape index: {}]   ;;  %s101_s2 = inlined_call_operand.vmem [shape: f32[8,1], index: 2, kind: input, shape index: {}]   ;;  %s102_s3 = inlined_call_operand.vmem [shape: f32[1,8,128], index: 3, kind: output, shape index: {}]  }
   0x1   :  { %v14_v0 = vld [vmem:[%s99_s0] sm:$0xff] }
   0x2   :  { %v18_v1 = vsel %vm17_vm0, %v14_v0, -inf  ;;  %v15_v2 = vld [vmem:[%s100_s1] sm:$0xff] }
   0x3   :  { %19 = vmax.xlane.f32.xlu0 %v18_v1  ;;  %v33_v3 = vsel %vm17_vm0, %v15_v2, 0.0  ;;  %v29_v4 = vmul.f32 %v15_v2, %v14_v0  ;;  %v16_v18 = vld [vmem:[%s101_s2] sm:$0xff] }
   0x4   :  { %34 = vadd.xlane.f32.xlu1 %v33_v3 }
   0x5   :  { %v30_v5 = vsel %vm17_vm0, %v29_v4, 0.0 }
   0x8   :  { %31 = vadd.xlane.f32.xlu1 %v30_v5 }
  0x90   :  { %v20_v6 = vpop.xlane.xlu0 %19 }
  0x91   :  { %v21_v7 = vsub.f32 %v14_v0, %v20_v6  ;;  %v35_v12 = vpop.xlane.xlu1 %34 }
  0x93   :  { %v22_v8 = vmul.f32 1.442695, %v21_v7 }
  0x95   :  { %59 = vpow2.f32 %v22_v8  ;;  %v32_v16 = vpop.xlane.xlu1 %31 }
  0x9f   :  { %v60_v9 = vpop.eup %59 }
  0xa0   :  { %v24_v10 = vsel %vm17_vm0, %v60_v9, 0.0 }
  0xa1   :  { %25 = vadd.xlane.f32.xlu0 %v24_v10 }
 0x12e   :  { %v26_v11 = vpop.xlane.xlu0 %25 }
 0x12f   :  { %61 = vlog2.f32 %v26_v11 }
 0x139   :  { %v62_v13 = vpop.eup %61 }
 0x13a   :  { %v28_v14 = vmul.f32 0.6931472, %v62_v13 }
 0x13c   :  { %v36_v15 = vadd.f32 %v28_v14, %v20_v6 }
 0x13e   :  { %v37_v17 = vmul.f32 %v36_v15, %v35_v12 }
 0x140   :  { %v38_v19 = vsub.f32 %v37_v17, %v32_v16 }
 0x142   :  { %v39_v20 = vmul.f32 %v38_v19, %v16_v18 }
 0x144   :  { %v41_v21 = vsel %vm40_vm1, %v39_v20, 0.0 }
 0x145   :  { %42 = vadd.xlane.f32.xlu0 %v41_v21 }
 0x1d2   :  { %v43_v22 = vpop.xlane.xlu0 %42 }
 0x1d3   :  { %v44_v23 = vrot.slane %v43_v22, 4 }
 0x1d5   :  { %v45_v24 = vadd.f32 %v44_v23, %v43_v22 }
 0x1d7   :  { %v46_v25 = vrot.slane %v45_v24, 2 }
 0x1d9   :  { %v47_v26 = vadd.f32 %v46_v25, %v45_v24 }
 0x1db   :  { %v48_v27 = vrot.slane %v47_v26, 1 }
 0x1dd   :  { %v49_v28 = vadd.f32 %v48_v27, %v47_v26 }
 0x1df   :  { %57 = vpush %v49_v28 }
 0x210   :  { %s58_s16 = spop %57 }
 0x211   :  { %v51_v29 = vstv %s58_s16 }
 0x212   :  { %52 = vst [vmem:[%s102_s3] sm:$0xff] %v51_v29 }

</bundles_post_ra>
